<compile_context>
chip_gen: v7x
topology: tpu7x:2x2x1
jax: 0.10.0
libtpu: 0.0.40
codegen_flags: <defaults>
</compile_context>

<pallas_src>
import jax
import jax.numpy as jnp
from jax.experimental import pallas as pl
from jax.experimental.pallas import tpu as pltpu


def basic_block_kernel(xt_ref, w1_ref, b1_ref, w2_ref, b2_ref,
                       wh_ref, bh_ref, out_ref):
    """Transposed BasicBlock: all activations are (features, batch_tile).

    xt_ref : (input_dim,    bt)          bf16   x^T tile (batch on lanes)
    w1_ref : (hidden_dim,   input_dim)   bf16   PyTorch (out, in) layout
    w2_ref : (hidden_dim,   hidden_dim)  bf16
    wh_ref : (2*output_dim, hidden_dim)  bf16   [W_mu ; W_logsigma]
    b*_ref : (features, 1)               f32    broadcast along lanes
    out_ref: (2*output_dim, bt)          bf16   [mu ; sigma] on sublanes
    """
    # Layer 1: h^T = tanh(W1 @ x^T + b1)   (f32 accumulation on the MXU)
    h = jnp.tanh(
        jnp.dot(w1_ref[...], xt_ref[...], preferred_element_type=jnp.float32)
        + b1_ref[...])
    # Layer 2: h^T = tanh(W2 @ h^T + b2)
    h = jnp.tanh(
        jnp.dot(w2_ref[...], h.astype(w2_ref.dtype),
                preferred_element_type=jnp.float32)
        + b2_ref[...])
    # Fused heads: one MXU pass -> [mu ; logsigma] stacked on sublanes.
    head = (jnp.dot(wh_ref[...], h.astype(wh_ref.dtype),
                    preferred_element_type=jnp.float32)
            + bh_ref[...])
    half = out_ref.shape[0] // 2          # = output_dim (static, aligned)
    # Two lane-dense stores; exp() runs only on the logsigma half (EUP slot).
    out_ref[:half, :] = head[:half, :].astype(out_ref.dtype)
    out_ref[half:, :] = jnp.exp(head[half:, :]).astype(out_ref.dtype)


def _vmem_capacity_bytes():
    """Generation-aware physical VMEM size (v5e/v6e: 128 MiB, v7x: 64 MiB)."""
    try:
        info = pltpu.get_tpu_info()
        cap = getattr(info, "vmem_capacity_bytes", None)
        if cap:
            return int(cap)
    except Exception:
        pass
    return 64 * 1024 * 1024   # conservative fallback = v7x per-TC VMEM


_MIN_ROWS_PER_TILE = 512  # below this, ~0.35us/step grid overhead dominates


def _pick_batch_tile(B, row_vmem_bytes, vmem_budget_bytes):
    """Largest lane-aligned tile (multiple of 128) that divides B, gives >=2
    grid steps, holds >= _MIN_ROWS_PER_TILE rows and fits the VMEM budget.
    Otherwise run the whole batch in one grid step (overhead-bound regime)."""
    for t in (8192, 4096, 2048, 1024, 512):
        if t < _MIN_ROWS_PER_TILE:
            break
        if (B % t == 0 and B // t >= 2
                and t * row_vmem_bytes <= vmem_budget_bytes):
            return t
    return B


def prepare_params(params, *, compute_dtype=jnp.bfloat16):
    """One-time weight prep (hoisted out of the per-call hot path):
    fuse the two heads, transpose to the kernel's (out, in) layout, cast MXU
    operands to bf16; biases stay f32 as column vectors so they broadcast
    along the lane/batch axis inside the kernel."""
    w1, b1 = params["w1"], params["b1"]          # (in, hid), (1, hid)
    w2, b2 = params["w2"], params["b2"]          # (hid, hid), (1, hid)
    wmu, bmu = params["wmu"], params["bmu"]      # (hid, out), (1, out)
    wls, bls = params["wls"], params["bls"]

    wh = jnp.concatenate([wmu, wls], axis=1)     # (hid, 2*out)
    bh = jnp.concatenate([bmu, bls], axis=1)     # (1,  2*out)

    return dict(
        w1t=jnp.asarray(w1.T, compute_dtype),    # (hid,   in)
        w2t=jnp.asarray(w2.T, compute_dtype),    # (hid,   hid)
        wht=jnp.asarray(wh.T, compute_dtype),    # (2*out, hid)
        b1c=jnp.asarray(b1.T, jnp.float32),      # (hid,   1)
        b2c=jnp.asarray(b2.T, jnp.float32),      # (hid,   1)
        bhc=jnp.asarray(bh.T, jnp.float32),      # (2*out, 1)
    )


def basic_block_forward(x, prepared, *, batch_tile=None,
                        out_dtype=jnp.float32):
    """x: (B, input_dim) f32; prepared: output of prepare_params().
    Returns (mu, sigma), each (B, output_dim) in out_dtype."""
    w1t, w2t, wht = prepared["w1t"], prepared["w2t"], prepared["wht"]
    b1c, b2c, bhc = prepared["b1c"], prepared["b2c"], prepared["bhc"]

    B, input_dim = x.shape
    hidden_dim = w1t.shape[0]
    two_out = wht.shape[0]
    output_dim = two_out // 2
    compute_dtype = w1t.dtype
    itemsize = compute_dtype.itemsize

    # Batch goes on the lane (last) axis: feed x^T, read [mu; sigma]^T back.
    xt = x.T.astype(compute_dtype)                          # (input_dim, B)

    # Generation-aware VMEM budgeting (>=16 MiB headroom below physical).
    vmem_cap = _vmem_capacity_bytes()
    vmem_budget = vmem_cap - 16 * 1024 * 1024
    weights_vmem = 2 * ((w1t.size + w2t.size + wht.size) * itemsize
                        + (b1c.size + b2c.size + bhc.size) * 4)
    row_vmem = 2 * (input_dim + two_out) * itemsize  # dbl-buffered x^T + out^T

    if batch_tile is None:
        batch_tile = _pick_batch_tile(B, row_vmem, vmem_budget - weights_vmem)
    assert B % batch_tile == 0
    grid = (B // batch_tile,)

    # Advisory cost estimate for XLA's scheduler.
    flops = 2 * B * (input_dim * hidden_dim
                     + hidden_dim * hidden_dim
                     + hidden_dim * two_out)
    transcendentals = B * (2 * hidden_dim + output_dim)     # tanh x2 + exp
    bytes_accessed = int(
        xt.size * itemsize                                  # x^T (bf16)
        + B * two_out * itemsize                            # packed out (bf16)
        + (w1t.size + w2t.size + wht.size) * itemsize       # weights (bf16)
        + (b1c.size + b2c.size + bhc.size) * 4)             # biases (f32)
    cost = pl.CostEstimate(flops=int(flops),
                           transcendentals=int(transcendentals),
                           bytes_accessed=bytes_accessed)

    est_vmem = int(weights_vmem + batch_tile * row_vmem)
    cp_kwargs = dict(dimension_semantics=("parallel",))
    if est_vmem > 12 * 1024 * 1024:
        # Raise the scoped-VMEM limit only when needed, never past the
        # generation-aware budget (v7x physical VMEM is only 64 MiB).
        cp_kwargs["vmem_limit_bytes"] = int(min(vmem_budget, 2 * est_vmem))
    compiler_params = pltpu.CompilerParams(**cp_kwargs)

    in_specs = [
        pl.BlockSpec((input_dim, batch_tile), lambda i: (0, i)),   # x^T tile
        pl.BlockSpec((hidden_dim, input_dim), lambda i: (0, 0)),   # W1 (out,in)
        pl.BlockSpec((hidden_dim, 1), lambda i: (0, 0)),           # b1
        pl.BlockSpec((hidden_dim, hidden_dim), lambda i: (0, 0)),  # W2
        pl.BlockSpec((hidden_dim, 1), lambda i: (0, 0)),           # b2
        pl.BlockSpec((two_out, hidden_dim), lambda i: (0, 0)),     # [Wmu;Wls]
        pl.BlockSpec((two_out, 1), lambda i: (0, 0)),              # [bmu;bls]
    ]
    out_specs = pl.BlockSpec((two_out, batch_tile), lambda i: (0, i))
    out_shape = jax.ShapeDtypeStruct((two_out, B), compute_dtype)

    packed_t = pl.pallas_call(
        basic_block_kernel,
        grid=grid,
        in_specs=in_specs,
        out_specs=out_specs,
        out_shape=out_shape,
        compiler_params=compiler_params,
        cost_estimate=cost,
    )(xt, w1t, b1c, w2t, b2c, wht, bhc)

    # Layout plumbing back to the module's (B, output_dim) interface.
    mu = packed_t[:output_dim, :].T.astype(out_dtype)
    sigma = packed_t[output_dim:, :].T.astype(out_dtype)
    return mu, sigma


def make_params(key, input_dim, hidden_dim, output_dim):
    """Deterministic synthetic parameters (PyTorch-like uniform init),
    stored in the x @ W + b layout used by the pure-JAX reference."""
    ks = jax.random.split(key, 8)

    def linear(kw, kb, fan_in, fan_out):
        bound = 1.0 / jnp.sqrt(fan_in)
        w = jax.random.uniform(kw, (fan_in, fan_out), jnp.float32, -bound, bound)
        b = jax.random.uniform(kb, (1, fan_out), jnp.float32, -bound, bound)
        return w, b

    w1, b1 = linear(ks[0], ks[1], input_dim, hidden_dim)
    w2, b2 = linear(ks[2], ks[3], hidden_dim, hidden_dim)
    wmu, bmu = linear(ks[4], ks[5], hidden_dim, output_dim)
    wls, bls = linear(ks[6], ks[7], hidden_dim, output_dim)
    return dict(w1=w1, b1=b1, w2=w2, b2=b2,
                wmu=wmu, bmu=bmu, wls=wls, bls=bls)


def basic_block_reference(x, p, compute_dtype=jnp.float32, round_output=None):
    """Pure-JAX reference matching the PyTorch forward.  compute_dtype /
    round_output let it mimic the kernel's bf16 operand casts and bf16
    output rounding for a tight comparison."""
    def c(a):
        return a.astype(compute_dtype)

    h = jnp.tanh(jnp.dot(c(x), c(p["w1"]),
                         preferred_element_type=jnp.float32) + p["b1"])
    h = jnp.tanh(jnp.dot(c(h), c(p["w2"]),
                         preferred_element_type=jnp.float32) + p["b2"])
    mu = jnp.dot(c(h), c(p["wmu"]),
                 preferred_element_type=jnp.float32) + p["bmu"]
    sigma = jnp.exp(jnp.dot(c(h), c(p["wls"]),
                            preferred_element_type=jnp.float32) + p["bls"])
    if round_output is not None:
        mu = mu.astype(round_output).astype(jnp.float32)
        sigma = sigma.astype(round_output).astype(jnp.float32)
    return mu, sigma


if __name__ == "__main__":
    key = jax.random.PRNGKey(0)
    k_x, k_p, k_x2 = jax.random.split(key, 3)

    input_dim, hidden_dim, output_dim = 32, 64, 16
    params = make_params(k_p, input_dim, hidden_dim, output_dim)

    # One-time weight prep (hoisted out of the hot path) — done eagerly once.
    prepared = jax.tree_util.tree_map(jax.block_until_ready,
                                      prepare_params(params))

    fwd = jax.jit(basic_block_forward)

    # Case 1: small batch -> single grid step (overhead-bound regime).
    x = jax.random.normal(k_x, (256, input_dim), jnp.float32)
    mu, sigma = fwd(x, prepared)
    jax.block_until_ready((mu, sigma))
    assert mu.shape == (256, output_dim)
    assert sigma.shape == (256, output_dim)

    # Tight check vs. a reference with the same bf16 operand/output rounding.
    mu_bf, sigma_bf = basic_block_reference(
        x, params, compute_dtype=jnp.bfloat16, round_output=jnp.bfloat16)
    assert jnp.allclose(mu, mu_bf, atol=2e-2, rtol=2e-2)
    assert jnp.allclose(sigma, sigma_bf, atol=2e-2, rtol=2e-2)

    # Loose sanity check vs. the pure-f32 PyTorch-equivalent math.
    mu_f32, sigma_f32 = basic_block_reference(x, params)
    assert jnp.allclose(mu, mu_f32, atol=1e-1, rtol=1e-1)
    assert jnp.allclose(sigma, sigma_f32, atol=1e-1, rtol=1e-1)

    # Case 2: larger batch -> 2 pipelined "parallel" grid steps of 512 rows.
    x2 = jax.random.normal(k_x2, (1024, input_dim), jnp.float32)
    mu2, sigma2 = fwd(x2, prepared)
    jax.block_until_ready((mu2, sigma2))
    assert mu2.shape == (1024, output_dim)
    mu2_bf, sigma2_bf = basic_block_reference(
        x2, params, compute_dtype=jnp.bfloat16, round_output=jnp.bfloat16)
    assert jnp.allclose(mu2, mu2_bf, atol=2e-2, rtol=2e-2)
    assert jnp.allclose(sigma2, sigma2_bf, atol=2e-2, rtol=2e-2)

    print("KERNEL_OK")
</pallas_src>

<mosaic_0001>
module attributes {stable_mosaic.version = 11 : i64} {
  func.func @basic_block_kernel(%arg0: i32, %arg1: memref<32x256xbf16, #tpu.memory_space<vmem>>, %arg2: memref<64x32xbf16, #tpu.memory_space<vmem>>, %arg3: memref<64x1xf32, #tpu.memory_space<vmem>>, %arg4: memref<64x64xbf16, #tpu.memory_space<vmem>>, %arg5: memref<64x1xf32, #tpu.memory_space<vmem>>, %arg6: memref<32x64xbf16, #tpu.memory_space<vmem>>, %arg7: memref<32x1xf32, #tpu.memory_space<vmem>>, %arg8: memref<32x256xbf16, #tpu.memory_space<vmem>>) attributes {dimension_semantics = [#tpu.dimension_semantics<parallel>], iteration_bounds = array<i64: 1>, scalar_prefetch = 0 : i64, scratch_operands = 0 : i64, tpu.core_type = #tpu.core_type<tc>, window_params = [{transform_indices = @transform_0, window_bounds = array<i64: 32, 256>}, {pipeline_mode = #tpu.pipeline_mode<synchronous>, transform_indices = @transform_1, window_bounds = array<i64: 64, 32>}, {pipeline_mode = #tpu.pipeline_mode<synchronous>, transform_indices = @transform_2, window_bounds = array<i64: 64, 1>}, {pipeline_mode = #tpu.pipeline_mode<synchronous>, transform_indices = @transform_3, window_bounds = array<i64: 64, 64>}, {pipeline_mode = #tpu.pipeline_mode<synchronous>, transform_indices = @transform_4, window_bounds = array<i64: 64, 1>}, {pipeline_mode = #tpu.pipeline_mode<synchronous>, transform_indices = @transform_5, window_bounds = array<i64: 32, 64>}, {pipeline_mode = #tpu.pipeline_mode<synchronous>, transform_indices = @transform_6, window_bounds = array<i64: 32, 1>}, {transform_indices = @transform_7, window_bounds = array<i64: 32, 256>}]} {
    %c0 = arith.constant 0 : index
    %c0_0 = arith.constant 0 : index
    %0 = vector.load %arg2[%c0, %c0_0] : memref<64x32xbf16, #tpu.memory_space<vmem>>, vector<64x32xbf16>
    %c0_1 = arith.constant 0 : index
    %c0_2 = arith.constant 0 : index
    %1 = vector.load %arg1[%c0_1, %c0_2] : memref<32x256xbf16, #tpu.memory_space<vmem>>, vector<32x256xbf16>
    %cst = arith.constant dense<0.000000e+00> : vector<64x256xf32>
    %2 = tpu.matmul %0, %1, %cst {dimension_numbers = #tpu.dot_dimension_numbers<[1], [0], [0], [1], [0, 0, 1, 1], [], []>} : vector<64x32xbf16>, vector<32x256xbf16>, vector<64x256xf32> -> vector<64x256xf32>
    %c0_3 = arith.constant 0 : index
    %c0_4 = arith.constant 0 : index
    %3 = vector.load %arg3[%c0_3, %c0_4] : memref<64x1xf32, #tpu.memory_space<vmem>>, vector<64x1xf32>
    %4 = vector.broadcast %3 : vector<64x1xf32> to vector<64x256xf32>
    %5 = arith.addf %2, %4 : vector<64x256xf32>
    %6 = math.tanh %5 : vector<64x256xf32>
    %c0_5 = arith.constant 0 : index
    %c0_6 = arith.constant 0 : index
    %7 = vector.load %arg4[%c0_5, %c0_6] : memref<64x64xbf16, #tpu.memory_space<vmem>>, vector<64x64xbf16>
    %8 = arith.truncf %6 : vector<64x256xf32> to vector<64x256xbf16>
    %cst_7 = arith.constant dense<0.000000e+00> : vector<64x256xf32>
    %9 = tpu.matmul %7, %8, %cst_7 {dimension_numbers = #tpu.dot_dimension_numbers<[1], [0], [0], [1], [0, 0, 1, 1], [], []>} : vector<64x64xbf16>, vector<64x256xbf16>, vector<64x256xf32> -> vector<64x256xf32>
    %c0_8 = arith.constant 0 : index
    %c0_9 = arith.constant 0 : index
    %10 = vector.load %arg5[%c0_8, %c0_9] : memref<64x1xf32, #tpu.memory_space<vmem>>, vector<64x1xf32>
    %11 = vector.broadcast %10 : vector<64x1xf32> to vector<64x256xf32>
    %12 = arith.addf %9, %11 : vector<64x256xf32>
    %13 = math.tanh %12 : vector<64x256xf32>
    %c0_10 = arith.constant 0 : index
    %c0_11 = arith.constant 0 : index
    %14 = vector.load %arg6[%c0_10, %c0_11] : memref<32x64xbf16, #tpu.memory_space<vmem>>, vector<32x64xbf16>
    %15 = arith.truncf %13 : vector<64x256xf32> to vector<64x256xbf16>
    %cst_12 = arith.constant dense<0.000000e+00> : vector<32x256xf32>
    %16 = tpu.matmul %14, %15, %cst_12 {dimension_numbers = #tpu.dot_dimension_numbers<[1], [0], [0], [1], [0, 0, 1, 1], [], []>} : vector<32x64xbf16>, vector<64x256xbf16>, vector<32x256xf32> -> vector<32x256xf32>
    %c0_13 = arith.constant 0 : index
    %c0_14 = arith.constant 0 : index
    %17 = vector.load %arg7[%c0_13, %c0_14] : memref<32x1xf32, #tpu.memory_space<vmem>>, vector<32x1xf32>
    %18 = vector.broadcast %17 : vector<32x1xf32> to vector<32x256xf32>
    %19 = arith.addf %16, %18 : vector<32x256xf32>
    %20 = vector.extract_strided_slice %19 {offsets = [0, 0], sizes = [16, 256], strides = [1, 1]} : vector<32x256xf32> to vector<16x256xf32>
    %21 = arith.truncf %20 : vector<16x256xf32> to vector<16x256xbf16>
    %c0_15 = arith.constant 0 : index
    %c0_16 = arith.constant 0 : index
    %22 = vector.load %arg8[%c0_15, %c0_16] : memref<32x256xbf16, #tpu.memory_space<vmem>>, vector<16x256xbf16>
    tpu.vector_store %arg8[%c0_15, %c0_16], %21 {strides = array<i32>} : memref<32x256xbf16, #tpu.memory_space<vmem>>, vector<16x256xbf16>,
    %23 = vector.extract_strided_slice %19 {offsets = [16, 0], sizes = [16, 256], strides = [1, 1]} : vector<32x256xf32> to vector<16x256xf32>
    %24 = math.exp %23 : vector<16x256xf32>
    %25 = arith.truncf %24 : vector<16x256xf32> to vector<16x256xbf16>
    %c16 = arith.constant 16 : index
    %c0_17 = arith.constant 0 : index
    %26 = vector.load %arg8[%c16, %c0_17] : memref<32x256xbf16, #tpu.memory_space<vmem>>, vector<16x256xbf16>
    tpu.vector_store %arg8[%c16, %c0_17], %25 {strides = array<i32>} : memref<32x256xbf16, #tpu.memory_space<vmem>>, vector<16x256xbf16>,
    return
  }
  func.func @transform_0(%arg0: i32) -> (i32, i32) {
    %c0_i32 = arith.constant 0 : i32
    %c0_i32_0 = arith.constant 0 : i32
    return %c0_i32, %arg0 : i32, i32
  }
  func.func @transform_1(%arg0: i32) -> (i32, i32) {
    %c0_i32 = arith.constant 0 : i32
    %c0_i32_0 = arith.constant 0 : i32
    %c0_i32_1 = arith.constant 0 : i32
    return %c0_i32, %c0_i32_0 : i32, i32
  }
  func.func @transform_2(%arg0: i32) -> (i32, i32) {
    %c0_i32 = arith.constant 0 : i32
    %c0_i32_0 = arith.constant 0 : i32
    %c0_i32_1 = arith.constant 0 : i32
    return %c0_i32, %c0_i32_0 : i32, i32
  }
  func.func @transform_3(%arg0: i32) -> (i32, i32) {
    %c0_i32 = arith.constant 0 : i32
    %c0_i32_0 = arith.constant 0 : i32
    %c0_i32_1 = arith.constant 0 : i32
    return %c0_i32, %c0_i32_0 : i32, i32
  }
  func.func @transform_4(%arg0: i32) -> (i32, i32) {
    %c0_i32 = arith.constant 0 : i32
    %c0_i32_0 = arith.constant 0 : i32
    %c0_i32_1 = arith.constant 0 : i32
    return %c0_i32, %c0_i32_0 : i32, i32
  }
  func.func @transform_5(%arg0: i32) -> (i32, i32) {
    %c0_i32 = arith.constant 0 : i32
    %c0_i32_0 = arith.constant 0 : i32
    %c0_i32_1 = arith.constant 0 : i32
    return %c0_i32, %c0_i32_0 : i32, i32
  }
  func.func @transform_6(%arg0: i32) -> (i32, i32) {
    %c0_i32 = arith.constant 0 : i32
    %c0_i32_0 = arith.constant 0 : i32
    %c0_i32_1 = arith.constant 0 : i32
    return %c0_i32, %c0_i32_0 : i32, i32
  }
  func.func @transform_7(%arg0: i32) -> (i32, i32) {
    %c0_i32 = arith.constant 0 : i32
    %c0_i32_0 = arith.constant 0 : i32
    return %c0_i32, %arg0 : i32, i32
  }
}

</mosaic_0001>

<bundles_post_ra>
// kernel: basic_block_forward.1
= control target key start
LH: loop header
LB: loop body
LE: loop exit
PB: predicated region body
PF: predicated region fallthrough
CT: control target
= control target key end

     0   :  { %v683_v1 = vmov 0   ;;  %vm127_vm0 = vcmask 261120   ;;  %vm313_vm1 = vcmask 523264   ;;  %s860_s0 = inlined_call_operand.vmem [shape: bf16[32,256], index: 0, kind: input, shape index: {}]   ;;  %s861_s1 = inlined_call_operand.vmem [shape: bf16[64,32], index: 1, kind: input, shape index: {}]   ;;  %s862_s2 = inlined_call_operand.vmem [shape: f32[64,1], index: 2, kind: input, shape index: {}]   ;;  %s863_s4 = inlined_call_operand.vmem [shape: f32[64,1], index: 4, kind: input, shape index: {}]   ;;  %s864_s6 = inlined_call_operand.vmem [shape: f32[32,1], index: 6, kind: input, shape index: {}]   ;;  %s865_s3 = inlined_call_operand.vmem [shape: bf16[64,64], index: 3, kind: input, shape index: {}]   ;;  %s866_s5 = inlined_call_operand.vmem [shape: bf16[32,64], index: 5, kind: input, shape index: {}]   ;;  %s867_s7 = inlined_call_operand.vmem [shape: bf16[32,256], index: 7, kind: output, shape index: {}]  }
   0x1   :  { %v595_v0 = vld [vmem:[%s860_s0 + $0x4] ss:$8 sps:$4 sm:$0xff]   ;;  %172 = vmatprep.mubr.bf16.mxu0 %v683_v1  ;;  %593 = vset.pattern.permute.xlu0 %v683_v1  ;;  %v597_v2 = vld [vmem:[%s860_s0] ss:$8 sps:$4 sm:$0xff]   ;;  %v598_v3 = vld [vmem:[%s860_s0 + $0x14] ss:$8 sps:$4 sm:$0xff]  }
   0x2   :  { %594 = vset.pattern.permute.xlu1 %v683_v1  ;;  %358 = vmatprep.mubr.bf16.mxu1 %v683_v1  ;;  %v600_v4 = vld [vmem:[%s860_s0 + $0x10] ss:$8 sps:$4 sm:$0xff]   ;;  %v601_v5 = vld [vmem:[%s861_s1] sm:$0xff]   ;;  %v40_v8 = vld [vmem:[%s862_s2 + $0x8] sm:$0xff] }
   0x3   :  { %140 = vmatprep.subr.bf16.mxu0 %v595_v0  ;;  %v39_v6 = vld [vmem:[%s862_s2] sm:$0xff]  ;;  %v41_v7 = vld [vmem:[%s862_s2 + $0x10] sm:$0xff]  ;;  %v42_v9 = vld [vmem:[%s862_s2 + $0x18] sm:$0xff] }
   0x4   :  { %141 = vmatpush1.bf16.msra.mxu0 %v597_v2  ;;  %49 = vperm.xlu0 %593, %v39_v6   ;;  %v43_v10 = vld [vmem:[%s862_s2 + $0x20] sm:$0xff]  ;;  %v44_v11 = vld [vmem:[%s862_s2 + $0x28] sm:$0xff]  ;;  %v45_v13 = vld [vmem:[%s862_s2 + $0x30] sm:$0xff] }
   0x5   :  { %142 = vmatprep.subr.bf16.mxu0 %v598_v3  ;;  %59 = vperm.xlu1 %594, %v41_v7   ;;  %v602_v12 = vld [vmem:[%s861_s1 + $0x8] sm:$0xff]   ;;  %v46_v14 = vld [vmem:[%s862_s2 + $0x38] sm:$0xff]  ;;  %v245_v15 = vld [vmem:[%s863_s4] sm:$0xff] }
   0x6   :  { %v246_v16 = vld [vmem:[%s863_s4 + $0x8] sm:$0xff]  ;;  %v603_v17 = vld [vmem:[%s861_s1 + $0x10] sm:$0xff]   ;;  %v248_v19 = vld [vmem:[%s863_s4 + $0x18] sm:$0xff] }
   0x7   :  { %v247_v18 = vld [vmem:[%s863_s4 + $0x10] sm:$0xff]  ;;  %v249_v20 = vld [vmem:[%s863_s4 + $0x20] sm:$0xff]  ;;  %v250_v21 = vld [vmem:[%s863_s4 + $0x28] sm:$0xff] }
   0x8   :  { %143 = vmatpush1.bf16.msra.mxu0 %v600_v4  ;;  %54 = vperm.xlu0 %593, %v40_v8   ;;  %v604_v22 = vld [vmem:[%s861_s1 + $0x18] sm:$0xff]   ;;  %v251_v23 = vld [vmem:[%s863_s4 + $0x30] sm:$0xff]  ;;  %v427_v27 = vld [vmem:[%s864_s6] sm:$0xff] }
   0x9   :  { %64 = vperm.xlu1 %594, %v42_v9   ;;  %v252_v24 = vld [vmem:[%s863_s4 + $0x38] sm:$0xff]  ;;  %v429_v25 = vld [vmem:[%s864_s6 + $0x10] sm:$0xff]  ;;  %v428_v28 = vld [vmem:[%s864_s6 + $0x8] sm:$0xff] }
   0xa   :  { %v430_v26 = vld [vmem:[%s864_s6 + $0x18] sm:$0xff] }
   0xb   :  { %568 = vmatmul.mubr.msk.bf16.vlgmr.msra.gmra.mrb[0].mxu0 %vm127_vm0, %v601_v5 }
   0xc   :  { %182 = vmatprep.mubr.bf16.mxu0 %v683_v1  ;;  %69 = vperm.xlu0 %593, %v43_v10  }
   0xd   :  { %74 = vperm.xlu1 %594, %v44_v11  }
  0x10   :  { %79 = vperm.xlu0 %593, %v45_v13  }
  0x11   :  { %84 = vperm.xlu1 %594, %v46_v14  }
  0x13   :  { %569 = vmatmul.mubr.msk.bf16.gmra.mrb[4].mxu0 %vm127_vm0, %v602_v12 }
  0x14   :  { %192 = vmatprep.mubr.bf16.mxu0 %v683_v1  ;;  %255 = vperm.xlu0 %593, %v245_v15  }
  0x15   :  { %260 = vperm.xlu1 %594, %v246_v16  }
  0x18   :  { %265 = vperm.xlu0 %593, %v247_v18  }
  0x19   :  { %270 = vperm.xlu1 %594, %v248_v19  }
  0x1b   :  { %570 = vmatmul.mubr.msk.bf16.gmra.mrb[8].mxu0 %vm127_vm0, %v603_v17 }
  0x1c   :  { %202 = vmatprep.mubr.bf16.mxu0 %v683_v1  ;;  %275 = vperm.xlu0 %593, %v249_v20  }
  0x1d   :  { %280 = vperm.xlu1 %594, %v250_v21  }
  0x20   :  { %285 = vperm.xlu0 %593, %v251_v23  }
  0x21   :  { %290 = vperm.xlu1 %594, %v252_v24  }
  0x23   :  { %571 = vmatmul.mubr.msk.bf16.gmra.mrb[12].mxu0 %vm127_vm0, %v604_v22 }
  0x24   :  { %499 = vmatprep.mubr.bf16.mxu0 %v683_v1  ;;  %443 = vperm.xlu0 %593, %v429_v25  }
  0x25   :  { %448 = vperm.xlu1 %594, %v430_v26  }
  0x28   :  { %433 = vperm.xlu0 %593, %v427_v27  }
  0x29   :  { %438 = vperm.xlu1 %594, %v428_v28  }
  0x83   :  { %v50_v29 = vpop.permute.xlu0 %49 }
  0x84   :  { %v60_v38 = vpop.permute.xlu1 %59 }
  0x87   :  { %v55_v33 = vpop.permute.xlu0 %54 }
  0x88   :  { %v65_v43 = vpop.permute.xlu1 %64 }
  0x8b   :  { %v70_v53 = vpop.permute.xlu0 %69 }
  0x8c   :  { %v75_v59 = vpop.permute.xlu1 %74 }
  0x8f   :  { %v80_v6 = vpop.permute.xlu0 %79 }
  0x90   :  { %v85_v12 = vpop.permute.xlu1 %84 }
  0xde   :  { %v174_v30 = vpop.f32.mrb[0].mxu0 }
  0xdf   :  { %v175_v31 = vadd.f32 %v174_v30, %v50_v29  ;;  %v176_v32 = vpop.f32.mrb[1].mxu0  ;;  %v605_v30 = vld [vmem:[%s865_s3] sm:$0xff]  }
  0xe0   :  { %v177_v34 = vadd.f32 %v176_v32, %v50_v29  ;;  %v178_v35 = vpop.f32.mrb[2].mxu0  ;;  %v607_v32 = vld [vmem:[%s865_s3 + $0x10] sm:$0xff]  }
  0xe1   :  { %611 = vtanh.f32 %v175_v31  ;;  %v179_v36 = vadd.f32 %v178_v35, %v55_v33  ;;  %v180_v37 = vpop.f32.mrb[3].mxu0  ;;  %v606_v31 = vld [vmem:[%s865_s3 + $0x8] sm:$0xff]  }
  0xe2   :  { %613 = vtanh.f32 %v177_v34  ;;  %v181_v39 = vadd.f32 %v180_v37, %v55_v33  ;;  %v608_v33 = vld [vmem:[%s865_s3 + $0x18] sm:$0xff]   ;;  %v256_v34 = vpop.permute.xlu0 %255 }
  0xe3   :  { %615 = vtanh.f32 %v179_v36 }
  0xe4   :  { %617 = vtanh.f32 %v181_v39 }
  0xe6   :  { %v184_v40 = vpop.f32.mrb[4].mxu0 }
  0xe7   :  { %v185_v41 = vadd.f32 %v184_v40, %v60_v38  ;;  %v186_v42 = vpop.f32.mrb[5].mxu0 }
  0xe8   :  { %v187_v44 = vadd.f32 %v186_v42, %v60_v38  ;;  %v188_v45 = vpop.f32.mrb[6].mxu0  ;;  %v261_v38 = vpop.permute.xlu1 %260 }
  0xe9   :  { %619 = vtanh.f32 %v185_v41  ;;  %v189_v46 = vadd.f32 %v188_v45, %v65_v43  ;;  %v190_v47 = vpop.f32.mrb[7].mxu0 }
  0xea   :  { %621 = vtanh.f32 %v187_v44  ;;  %v191_v48 = vadd.f32 %v190_v47, %v65_v43  ;;  %v266_v44 = vpop.permute.xlu0 %265 }
  0xeb   :  { %v612_v49 = vpop.eup %611  ;;  %623 = vtanh.f32 %v189_v46 }
  0xec   :  { %v614_v50 = vpop.eup %613  ;;  %625 = vtanh.f32 %v191_v48  ;;  %v271_v48 = vpop.permute.xlu1 %270 }
  0xed   :  { %v616_v51 = vpop.eup %615 }
  0xee   :  { %v618_v52 = vpop.eup %617  ;;  %v194_v54 = vpop.f32.mrb[8].mxu0  ;;  %v237_v55 = vpack.c.bf16 %v616_v51, %v612_v49 }
  0xef   :  { %v195_v56 = vadd.f32 %v194_v54, %v70_v53  ;;  %v196_v57 = vpop.f32.mrb[9].mxu0  ;;  %v238_v58 = vpack.c.bf16 %v618_v52, %v614_v50 }
  0xf0   :  { %v197_v60 = vadd.f32 %v196_v57, %v70_v53  ;;  %v198_v61 = vpop.f32.mrb[10].mxu0 }
  0xf1   :  { %627 = vtanh.f32 %v195_v56  ;;  %v199_v62 = vadd.f32 %v198_v61, %v75_v59  ;;  %v200_v63 = vpop.f32.mrb[11].mxu0  ;;  %326 = vmatprep.subr.bf16.mxu1 %v238_v58  ;;  %v276_v58 = vpop.permute.xlu0 %275 }
  0xf2   :  { %629 = vtanh.f32 %v197_v60  ;;  %v201_v0 = vadd.f32 %v200_v63, %v75_v59  ;;  %327 = vmatpush1.bf16.msra.mxu1 %v237_v55 }
  0xf3   :  { %v620_v2 = vpop.eup %619  ;;  %631 = vtanh.f32 %v199_v62 }
  0xf4   :  { %v622_v3 = vpop.eup %621  ;;  %633 = vtanh.f32 %v201_v0  ;;  %v281_v0 = vpop.permute.xlu1 %280 }
  0xf5   :  { %v624_v4 = vpop.eup %623 }
  0xf6   :  { %v626_v5 = vpop.eup %625  ;;  %v204_v7 = vpop.f32.mrb[12].mxu0  ;;  %v239_v8 = vpack.c.bf16 %v624_v4, %v620_v2 }
  0xf7   :  { %v205_v9 = vadd.f32 %v204_v7, %v80_v6  ;;  %v206_v10 = vpop.f32.mrb[13].mxu0  ;;  %v240_v11 = vpack.c.bf16 %v626_v5, %v622_v3 }
  0xf8   :  { %v207_v13 = vadd.f32 %v206_v10, %v80_v6  ;;  %v208_v14 = vpop.f32.mrb[14].mxu0 }
  0xf9   :  { %635 = vtanh.f32 %v205_v9  ;;  %v209_v15 = vadd.f32 %v208_v14, %v85_v12  ;;  %v210_v16 = vpop.f32.mrb[15].mxu0  ;;  %328 = vmatprep.subr.bf16.mxu1 %v240_v11  ;;  %v286_v11 = vpop.permute.xlu0 %285 }
  0xfa   :  { %637 = vtanh.f32 %v207_v13  ;;  %v211_v17 = vadd.f32 %v210_v16, %v85_v12  ;;  %329 = vmatpush1.bf16.msra.mxu1 %v239_v8 }
  0xfb   :  { %v628_v18 = vpop.eup %627  ;;  %639 = vtanh.f32 %v209_v15 }
  0xfc   :  { %v630_v19 = vpop.eup %629  ;;  %641 = vtanh.f32 %v211_v17  ;;  %v291_v17 = vpop.permute.xlu1 %290 }
  0xfd   :  { %v632_v20 = vpop.eup %631 }
  0xfe   :  { %v634_v21 = vpop.eup %633  ;;  %v241_v22 = vpack.c.bf16 %v632_v20, %v628_v18 }
  0xff   :  { %v242_v23 = vpack.c.bf16 %v634_v21, %v630_v19 }
 0x101   :  { %330 = vmatprep.subr.bf16.mxu1 %v242_v23 }
 0x102   :  { %331 = vmatpush1.bf16.msra.mxu1 %v241_v22 }
 0x103   :  { %v636_v24 = vpop.eup %635 }
 0x104   :  { %v638_v25 = vpop.eup %637 }
 0x105   :  { %v640_v26 = vpop.eup %639 }
 0x106   :  { %v642_v27 = vpop.eup %641  ;;  %v243_v28 = vpack.c.bf16 %v640_v26, %v636_v24 }
 0x107   :  { %v244_v29 = vpack.c.bf16 %v642_v27, %v638_v25 }
 0x109   :  { %332 = vmatprep.subr.bf16.mxu1 %v244_v29 }
 0x10a   :  { %333 = vmatpush1.bf16.msra.mxu1 %v243_v28 }
 0x10d   :  { %576 = vmatmul.mubr.msk.bf16.vlgmr.msra.gmra.mrb[0].mxu1 %vm313_vm1, %v605_v30 }
 0x10e   :  { %368 = vmatprep.mubr.bf16.mxu1 %v683_v1 }
 0x115   :  { %577 = vmatmul.mubr.msk.bf16.gmra.mrb[4].mxu1 %vm313_vm1, %v606_v31 }
 0x116   :  { %378 = vmatprep.mubr.bf16.mxu1 %v683_v1 }
 0x11d   :  { %578 = vmatmul.mubr.msk.bf16.gmra.mrb[8].mxu1 %vm313_vm1, %v607_v32 }
 0x11e   :  { %388 = vmatprep.mubr.bf16.mxu1 %v683_v1 }
 0x125   :  { %579 = vmatmul.mubr.msk.bf16.gmra.mrb[12].mxu1 %vm313_vm1, %v608_v33 }
 0x1e0   :  { %v360_v35 = vpop.f32.mrb[0].mxu1 }
 0x1e1   :  { %v361_v36 = vadd.f32 %v360_v35, %v256_v34  ;;  %v362_v37 = vpop.f32.mrb[1].mxu1  ;;  %v609_v35 = vld [vmem:[%s866_s5] sm:$0xff]  }
 0x1e2   :  { %v363_v39 = vadd.f32 %v362_v37, %v256_v34  ;;  %v364_v40 = vpop.f32.mrb[2].mxu1  ;;  %v444_v37 = vpop.permute.xlu0 %443 }
 0x1e3   :  { %643 = vtanh.f32 %v361_v36  ;;  %v365_v41 = vadd.f32 %v364_v40, %v261_v38  ;;  %v366_v42 = vpop.f32.mrb[3].mxu1  ;;  %v610_v36 = vld [vmem:[%s866_s5 + $0x8] sm:$0xff]  }
 0x1e4   :  { %645 = vtanh.f32 %v363_v39  ;;  %v367_v43 = vadd.f32 %v366_v42, %v261_v38  ;;  %v449_v38 = vpop.permute.xlu1 %448 }
 0x1e5   :  { %647 = vtanh.f32 %v365_v41 }
 0x1e6   :  { %649 = vtanh.f32 %v367_v43  ;;  %v434_v39 = vpop.permute.xlu0 %433 }
 0x1e8   :  { %v370_v45 = vpop.f32.mrb[4].mxu1  ;;  %v439_v43 = vpop.permute.xlu1 %438 }
 0x1e9   :  { %v371_v46 = vadd.f32 %v370_v45, %v266_v44  ;;  %v372_v47 = vpop.f32.mrb[5].mxu1 }
 0x1ea   :  { %v373_v49 = vadd.f32 %v372_v47, %v266_v44  ;;  %v374_v50 = vpop.f32.mrb[6].mxu1 }
 0x1eb   :  { %651 = vtanh.f32 %v371_v46  ;;  %v375_v51 = vadd.f32 %v374_v50, %v271_v48  ;;  %v376_v52 = vpop.f32.mrb[7].mxu1 }
 0x1ec   :  { %653 = vtanh.f32 %v373_v49  ;;  %v377_v53 = vadd.f32 %v376_v52, %v271_v48 }
 0x1ed   :  { %v644_v54 = vpop.eup %643  ;;  %655 = vtanh.f32 %v375_v51 }
 0x1ee   :  { %v646_v55 = vpop.eup %645  ;;  %657 = vtanh.f32 %v377_v53 }
 0x1ef   :  { %v648_v56 = vpop.eup %647 }
 0x1f0   :  { %v650_v57 = vpop.eup %649  ;;  %v380_v59 = vpop.f32.mrb[8].mxu1  ;;  %v419_v60 = vpack.c.bf16 %v648_v56, %v644_v54 }
 0x1f1   :  { %v381_v61 = vadd.f32 %v380_v59, %v276_v58  ;;  %v382_v62 = vpop.f32.mrb[9].mxu1  ;;  %v420_v63 = vpack.c.bf16 %v650_v57, %v646_v55 }
 0x1f2   :  { %v383_v2 = vadd.f32 %v382_v62, %v276_v58  ;;  %v384_v3 = vpop.f32.mrb[10].mxu1 }
 0x1f3   :  { %659 = vtanh.f32 %v381_v61  ;;  %v385_v4 = vadd.f32 %v384_v3, %v281_v0  ;;  %v386_v5 = vpop.f32.mrb[11].mxu1  ;;  %467 = vmatprep.subr.bf16.mxu0 %v420_v63 }
 0x1f4   :  { %661 = vtanh.f32 %v383_v2  ;;  %v387_v6 = vadd.f32 %v386_v5, %v281_v0  ;;  %468 = vmatpush1.bf16.msra.mxu0 %v419_v60 }
 0x1f5   :  { %v652_v7 = vpop.eup %651  ;;  %663 = vtanh.f32 %v385_v4 }
 0x1f6   :  { %v654_v8 = vpop.eup %653  ;;  %665 = vtanh.f32 %v387_v6 }
 0x1f7   :  { %v656_v9 = vpop.eup %655 }
 0x1f8   :  { %v658_v10 = vpop.eup %657  ;;  %v390_v12 = vpop.f32.mrb[12].mxu1  ;;  %v421_v13 = vpack.c.bf16 %v656_v9, %v652_v7 }
 0x1f9   :  { %v391_v14 = vadd.f32 %v390_v12, %v286_v11  ;;  %v392_v15 = vpop.f32.mrb[13].mxu1  ;;  %v422_v16 = vpack.c.bf16 %v658_v10, %v654_v8 }
 0x1fa   :  { %v393_v18 = vadd.f32 %v392_v15, %v286_v11  ;;  %v394_v19 = vpop.f32.mrb[14].mxu1 }
 0x1fb   :  { %667 = vtanh.f32 %v391_v14  ;;  %v395_v20 = vadd.f32 %v394_v19, %v291_v17  ;;  %v396_v21 = vpop.f32.mrb[15].mxu1  ;;  %469 = vmatprep.subr.bf16.mxu0 %v422_v16 }
 0x1fc   :  { %669 = vtanh.f32 %v393_v18  ;;  %v397_v22 = vadd.f32 %v396_v21, %v291_v17  ;;  %470 = vmatpush1.bf16.msra.mxu0 %v421_v13 }
 0x1fd   :  { %v660_v23 = vpop.eup %659  ;;  %671 = vtanh.f32 %v395_v20 }
 0x1fe   :  { %v662_v24 = vpop.eup %661  ;;  %673 = vtanh.f32 %v397_v22 }
 0x1ff   :  { %v664_v25 = vpop.eup %663 }
 0x200   :  { %v666_v26 = vpop.eup %665  ;;  %v423_v27 = vpack.c.bf16 %v664_v25, %v660_v23 }
 0x201   :  { %v424_v28 = vpack.c.bf16 %v666_v26, %v662_v24 }
 0x203   :  { %471 = vmatprep.subr.bf16.mxu0 %v424_v28 }
 0x204   :  { %472 = vmatpush1.bf16.msra.mxu0 %v423_v27 }
 0x205   :  { %v668_v29 = vpop.eup %667 }
 0x206   :  { %v670_v30 = vpop.eup %669 }
 0x207   :  { %v672_v31 = vpop.eup %671 }
 0x208   :  { %v674_v32 = vpop.eup %673  ;;  %v425_v33 = vpack.c.bf16 %v672_v31, %v668_v29 }
 0x209   :  { %v426_v34 = vpack.c.bf16 %v674_v32, %v670_v30 }
 0x20b   :  { %473 = vmatprep.subr.bf16.mxu0 %v426_v34 }
 0x20c   :  { %474 = vmatpush1.bf16.msra.mxu0 %v425_v33 }
 0x20f   :  { %582 = vmatmul.mubr.msk.bf16.vlgmr.msra.gmra.mrb[16].mxu0 %vm313_vm1, %v609_v35 }
 0x210   :  { %509 = vmatprep.mubr.bf16.mxu0 %v683_v1 }
 0x217   :  { %583 = vmatmul.mubr.msk.bf16.gmra.mrb[20].mxu0 %vm313_vm1, %v610_v36 }
 0x2e2   :  { %v501_v40 = vpop.f32.mrb[16].mxu0 }
 0x2e3   :  { %v502_v41 = vadd.f32 %v501_v40, %v434_v39  ;;  %v503_v42 = vpop.f32.mrb[17].mxu0 }
 0x2e4   :  { %v504_v44 = vadd.f32 %v503_v42, %v434_v39  ;;  %v505_v45 = vpop.f32.mrb[18].mxu0 }
 0x2e5   :  { %v506_v46 = vadd.f32 %v505_v45, %v439_v43  ;;  %v507_v47 = vpop.f32.mrb[19].mxu0 }
 0x2e6   :  { %v588_v48 = vpack.c.bf16 %v504_v44, %v502_v41  ;;  %v508_v49 = vadd.f32 %v507_v47, %v439_v43 }
 0x2e8   :  { %532 = vst [vmem:[%s867_s7] sm:$0xff] %v588_v48  ;;  %v589_v1 = vpack.c.bf16 %v508_v49, %v506_v46 }
 0x2ea   :  { %533 = vst [vmem:[%s867_s7 + $0x8] sm:$0xff] %v589_v1  ;;  %v511_v50 = vpop.f32.mrb[20].mxu0 }
 0x2eb   :  { %v512_v51 = vadd.f32 %v511_v50, %v444_v37  ;;  %v513_v52 = vpop.f32.mrb[21].mxu0 }
 0x2ec   :  { %v514_v53 = vadd.f32 %v513_v52, %v444_v37  ;;  %v515_v54 = vpop.f32.mrb[22].mxu0 }
 0x2ed   :  { %v534_v55 = vmul.f32 1.442695, %v512_v51  ;;  %v516_v56 = vadd.f32 %v515_v54, %v449_v38  ;;  %v517_v57 = vpop.f32.mrb[23].mxu0 }
 0x2ee   :  { %v536_v58 = vmul.f32 1.442695, %v514_v53  ;;  %v518_v59 = vadd.f32 %v517_v57, %v449_v38 }
 0x2ef   :  { %675 = vpow2.f32 %v534_v55  ;;  %v538_v60 = vmul.f32 1.442695, %v516_v56 }
 0x2f0   :  { %677 = vpow2.f32 %v536_v58  ;;  %v540_v61 = vmul.f32 1.442695, %v518_v59 }
 0x2f1   :  { %679 = vpow2.f32 %v538_v60 }
 0x2f2   :  { %681 = vpow2.f32 %v540_v61 }
 0x2f9   :  { %v676_v62 = vpop.eup %675 }
 0x2fa   :  { %v678_v63 = vpop.eup %677 }
 0x2fb   :  { %v680_v0 = vpop.eup %679  ;;  %v590_v2 = vpack.c.bf16 %v678_v63, %v676_v62 }
 0x2fc   :  { %v682_v3 = vpop.eup %681 }
 0x2fd   :  { %554 = vst [vmem:[%s867_s7 + $0x10] sm:$0xff] %v590_v2  ;;  %v591_v4 = vpack.c.bf16 %v682_v3, %v680_v0 }
 0x2ff   :  { %555 = vst [vmem:[%s867_s7 + $0x18] sm:$0xff] %v591_v4 }

</bundles_post_ra>
